<compile_context>
chip_gen: v7x
topology: tpu7x:2x2x1
jax: 0.10.0
libtpu: 0.0.40
codegen_flags: <defaults>
</compile_context>

<pallas_src>
import functools

import jax
import jax.numpy as jnp
from jax.experimental import pallas as pl
from jax.experimental.pallas import tpu as pltpu

_NEG_BIG = -1e30  # finite "minus infinity" for masked vocab columns (never NaN)


def _round_up(x, m):
    return (x + m - 1) // m * m


def _choose_token_block(n, max_tb=2048):
    """Largest multiple-of-8 block (<= max_tb) that divides the 8-padded token
    count, preferring >= 2 grid steps so v7x's two TensorCores both get work."""
    n8 = _round_up(max(n, 1), 8)
    divisors = [d for d in range(8, min(max_tb, n8) + 1, 8) if n8 % d == 0]
    multi = [d for d in divisors if n8 // d >= 2]
    if multi:
        return max(multi)
    return max(divisors) if divisors else min(max_tb, n8)


def _gather_logits(idx_ref, table_ref, out_dtype):
    """Embedding lookup as a lane-dense MXU matmul: one_hot(idx) @ table."""
    tb = idx_ref.shape[0]
    vp = table_ref.shape[1]
    col = jax.lax.broadcasted_iota(jnp.int32, (tb, vp), 1)            # (TB, Vp)
    one_hot = (col == idx_ref[...]).astype(jnp.float32)               # exact 0/1
    # f32 keeps the row-select bit-exact; on v5e (if vmatmul binds) a bf16 one-hot
    # + bf16/hi-lo table would cut MXU passes ~3x.
    logits = jnp.dot(one_hot, table_ref[...],
                     preferred_element_type=jnp.float32)              # (TB, Vp)
    return col, logits, logits.astype(out_dtype)


def bigram_logits_kernel(idx_ref, table_ref, logits_ref):
    """Inference path: embedding gather only -- no cross-entropy work at all."""
    _, _, out = _gather_logits(idx_ref, table_ref, logits_ref.dtype)
    logits_ref[...] = out


def bigram_loss_kernel(idx_ref, tgt_ref, table_ref, logits_ref, loss_ref, *, n_valid):
    """Training path: gather + fused cross-entropy, reduced to one running scalar.

    idx_ref:    (TB, 1)   int32   token ids
    tgt_ref:    (TB, 1)   int32   target ids (0 for padded rows)
    table_ref:  (Vp, Vp)  float32 table; padded columns pre-biased to -1e30
    logits_ref: (TB, Vp)  padded logits (lane-dense store)
    loss_ref:   (1, 1)    float32 running sum of per-token CE (resident accumulator)
    """
    tb = idx_ref.shape[0]
    col, logits, out = _gather_logits(idx_ref, table_ref, logits_ref.dtype)
    logits_ref[...] = out

    # Padded vocab columns already hold -1e30 (host pre-bias), so logsumexp
    # ignores them without any in-kernel compare/select.
    m = jnp.max(logits, axis=-1, keepdims=True)                       # (TB, 1)
    e = jnp.exp(logits - m)
    lse = m + jnp.log(jnp.sum(e, axis=-1, keepdims=True))             # (TB, 1)

    # Target logit via select + cross-lane reduce (no f32 one-hot / extra vmul).
    tgt_logit = jnp.sum(jnp.where(col == tgt_ref[...], logits, 0.0),
                        axis=-1, keepdims=True)                       # (TB, 1)

    row_global = (pl.program_id(0) * tb
                  + jax.lax.broadcasted_iota(jnp.int32, (tb, 1), 0))  # (TB, 1)
    per_tok = jnp.where(row_global < n_valid, lse - tgt_logit, 0.0)
    block_sum = jnp.sum(per_tok, axis=0, keepdims=True)               # (1, 1)

    @pl.when(pl.program_id(0) == 0)
    def _():
        loss_ref[...] = jnp.zeros_like(loss_ref)

    loss_ref[...] += block_sum


def bigram_forward(idx, table, targets=None, *, logits_dtype=None,
                   keep_padded_vocab=False):
    """idx: (B, T) int tokens; table: (V, V) float embedding table.

    Returns (logits, loss) matching BigramLanguageModel.forward.
    logits_dtype=jnp.bfloat16 halves the dominant logits HBM writeback (v6e/v7x);
    keep_padded_vocab=True returns (B, T, V_pad) logits and skips the wrapper
    slice that would otherwise re-stream the whole logits array through HBM.
    """
    B, T = idx.shape
    V = table.shape[0]
    N = B * T
    if logits_dtype is None:
        logits_dtype = table.dtype

    V_pad = _round_up(max(V, 128), 128)
    TB = _choose_token_block(N)
    N_pad = _round_up(N, TB)
    num_blocks = N_pad // TB

    # Zero-pad the table to (Vp, Vp); pre-bias the padded vocab *columns* to -1e30
    # so the one-hot matmul emits already-masked logits.  At V=65 the resident
    # table is 64 KiB -- negligible even double-buffered on v7x's 64 MiB VMEM.
    # For very large V, move it to memory_space=pl.ANY with a one-time manual copy
    # or K-tile the matmul and set vmem_limit_bytes explicitly.
    table_pad = jnp.zeros((V_pad, V_pad), jnp.float32).at[:V, :V].set(
        table.astype(jnp.float32))
    if V_pad > V:
        table_pad = table_pad.at[:, V:].set(_NEG_BIG)

    idx_flat = idx.reshape(-1).astype(jnp.int32)
    idx_pad = jnp.zeros((N_pad,), jnp.int32).at[:N].set(idx_flat).reshape(N_pad, 1)

    token_spec = pl.BlockSpec((TB, 1), lambda i: (i, 0))
    table_spec = pl.BlockSpec((V_pad, V_pad), lambda i: (0, 0))   # grid-resident
    logits_spec = pl.BlockSpec((TB, V_pad), lambda i: (i, 0))     # lane-dense store

    if targets is None:
        logits_pad = pl.pallas_call(
            bigram_logits_kernel,
            out_shape=jax.ShapeDtypeStruct((N_pad, V_pad), logits_dtype),
            grid_spec=pltpu.PrefetchScalarGridSpec(
                num_scalar_prefetch=0,
                grid=(num_blocks,),
                in_specs=[token_spec, table_spec],
                out_specs=logits_spec,
            ),
            compiler_params=pltpu.CompilerParams(
                dimension_semantics=("parallel",),
            ),
        )(idx_pad, table_pad)
        loss = None
    else:
        tgt_flat = targets.reshape(-1).astype(jnp.int32)
        tgt_pad = jnp.zeros((N_pad,), jnp.int32).at[:N].set(tgt_flat).reshape(N_pad, 1)

        kernel = functools.partial(bigram_loss_kernel, n_valid=N)
        logits_pad, loss_sum = pl.pallas_call(
            kernel,
            out_shape=(
                jax.ShapeDtypeStruct((N_pad, V_pad), logits_dtype),
                jax.ShapeDtypeStruct((1, 1), jnp.float32),
            ),
            grid_spec=pltpu.PrefetchScalarGridSpec(
                num_scalar_prefetch=0,
                grid=(num_blocks,),
                in_specs=[token_spec, token_spec, table_spec],
                out_specs=[
                    logits_spec,
                    # Single resident (1,1) accumulator: no lane-sparse per-token
                    # loss stores, written back to HBM once at grid end.
                    pl.BlockSpec((1, 1), lambda i: (0, 0)),
                ],
            ),
            # The loss accumulator block is revisited across the grid axis, so it
            # must be sequential ("arbitrary"); the CE-free path stays "parallel".
            compiler_params=pltpu.CompilerParams(
                dimension_semantics=("arbitrary",),
            ),
        )(idx_pad, tgt_pad, table_pad)
        loss = loss_sum[0, 0] / jnp.float32(N)

    if keep_padded_vocab and N_pad == N:
        logits = logits_pad.reshape(B, T, V_pad)      # free reshape, no re-stream
    else:
        logits = logits_pad[:N, :V].reshape(B, T, V)
    return logits, loss


if __name__ == "__main__":
    vocab_size = 65

    key = jax.random.PRNGKey(0)
    k_tab, k_idx, k_tgt = jax.random.split(key, 3)
    table = jax.random.normal(k_tab, (vocab_size, vocab_size), dtype=jnp.float32)

    def reference(idx_, tgt_):
        ref_logits = table[idx_]                                       # (B, T, V)
        flat = ref_logits.reshape(-1, vocab_size)
        lse = jax.nn.logsumexp(flat, axis=-1)
        picked = jnp.take_along_axis(flat, tgt_.reshape(-1, 1), axis=-1)[:, 0]
        return ref_logits, jnp.mean(lse - picked)

    # Case 1: (B, T) = (2, 8) -> 16 tokens, 2 grid blocks.
    B, T = 2, 8
    idx = jax.random.randint(k_idx, (B, T), 0, vocab_size, dtype=jnp.int32)
    targets = jax.random.randint(k_tgt, (B, T), 0, vocab_size, dtype=jnp.int32)

    logits, loss = jax.block_until_ready(bigram_forward(idx, table, targets))
    ref_logits, ref_loss = reference(idx, targets)
    assert logits.shape == (B, T, vocab_size)
    assert jnp.allclose(logits, ref_logits, atol=1e-5, rtol=1e-5), "logits mismatch"
    assert jnp.allclose(loss, ref_loss, atol=1e-4, rtol=1e-5), "loss mismatch"

    # Inference path (targets=None): CE-free kernel, "parallel" grid.
    logits_inf, loss_inf = jax.block_until_ready(bigram_forward(idx, table))
    assert loss_inf is None
    assert jnp.allclose(logits_inf, ref_logits, atol=1e-5, rtol=1e-5), \
        "inference logits mismatch"

    # Case 2: ragged token count (B, T) = (3, 7) -> 21 tokens, exercises row padding.
    B2, T2 = 3, 7
    k_idx2, k_tgt2 = jax.random.split(jax.random.PRNGKey(1))
    idx2 = jax.random.randint(k_idx2, (B2, T2), 0, vocab_size, dtype=jnp.int32)
    tgt2 = jax.random.randint(k_tgt2, (B2, T2), 0, vocab_size, dtype=jnp.int32)
    logits2, loss2 = jax.block_until_ready(bigram_forward(idx2, table, tgt2))
    ref_logits2, ref_loss2 = reference(idx2, tgt2)
    assert jnp.allclose(logits2, ref_logits2, atol=1e-5, rtol=1e-5), \
        "logits mismatch (padded rows)"
    assert jnp.allclose(loss2, ref_loss2, atol=1e-4, rtol=1e-5), \
        "loss mismatch (padded rows)"

    print("KERNEL_OK")
</pallas_src>

<mosaic_0001>
module attributes {stable_mosaic.version = 11 : i64} {
  func.func @bigram_loss_kernel(%arg0: i32, %arg1: memref<8x1xi32, #tpu.memory_space<vmem>>, %arg2: memref<8x1xi32, #tpu.memory_space<vmem>>, %arg3: memref<128x128xf32, #tpu.memory_space<vmem>>, %arg4: memref<8x128xf32, #tpu.memory_space<vmem>>, %arg5: memref<1x1xf32, #tpu.memory_space<vmem>>) attributes {dimension_semantics = [#tpu.dimension_semantics<arbitrary>], iteration_bounds = array<i64: 2>, scalar_prefetch = 0 : i64, scratch_operands = 0 : i64, tpu.core_type = #tpu.core_type<tc>, window_params = [{transform_indices = @transform_0, window_bounds = array<i64: 8, 1>}, {transform_indices = @transform_1, window_bounds = array<i64: 8, 1>}, {pipeline_mode = #tpu.pipeline_mode<synchronous>, transform_indices = @transform_2, window_bounds = array<i64: 128, 128>}, {transform_indices = @transform_3, window_bounds = array<i64: 8, 128>}, {pipeline_mode = #tpu.pipeline_mode<synchronous>, transform_indices = @transform_4, window_bounds = array<i64: 1, 1>}]} {
    %0 = tpu.iota {dimensions = array<i32: 1>} : vector<8x128xi32>
    %c0 = arith.constant 0 : index
    %c0_0 = arith.constant 0 : index
    %1 = vector.load %arg1[%c0, %c0_0] : memref<8x1xi32, #tpu.memory_space<vmem>>, vector<8x1xi32>
    %2 = vector.broadcast %1 : vector<8x1xi32> to vector<8x128xi32>
    %3 = arith.cmpi eq, %0, %2 : vector<8x128xi32>
    %4 = arith.extui %3 : vector<8x128xi1> to vector<8x128xi32>
    %5 = arith.sitofp %4 : vector<8x128xi32> to vector<8x128xf32>
    %c0_1 = arith.constant 0 : index
    %c0_2 = arith.constant 0 : index
    %6 = vector.load %arg3[%c0_1, %c0_2] : memref<128x128xf32, #tpu.memory_space<vmem>>, vector<128x128xf32>
    %cst = arith.constant dense<0.000000e+00> : vector<8x128xf32>
    %7 = tpu.matmul %5, %6, %cst {dimension_numbers = #tpu.dot_dimension_numbers<[1], [0], [0], [1], [0, 0, 1, 1], [], []>} : vector<8x128xf32>, vector<128x128xf32>, vector<8x128xf32> -> vector<8x128xf32>
    %c0_3 = arith.constant 0 : index
    %c0_4 = arith.constant 0 : index
    %8 = vector.load %arg4[%c0_3, %c0_4] : memref<8x128xf32, #tpu.memory_space<vmem>>, vector<8x128xf32>
    tpu.vector_store %arg4[%c0_3, %c0_4], %7 {strides = array<i32>} : memref<8x128xf32, #tpu.memory_space<vmem>>, vector<8x128xf32>,
    %cst_5 = arith.constant dense<0xFF800000> : vector<8xf32>
    %9 = vector.multi_reduction <maximumf>, %7, %cst_5 [1] : vector<8x128xf32> to vector<8xf32>
    %10 = vector.shape_cast %9 : vector<8xf32> to vector<8x1xf32>
    %11 = vector.broadcast %10 : vector<8x1xf32> to vector<8x128xf32>
    %12 = arith.subf %7, %11 : vector<8x128xf32>
    %13 = math.exp %12 : vector<8x128xf32>
    %cst_6 = arith.constant dense<0.000000e+00> : vector<8xf32>
    %14 = vector.multi_reduction <add>, %13, %cst_6 [1] : vector<8x128xf32> to vector<8xf32>
    %15 = vector.shape_cast %14 : vector<8xf32> to vector<8x1xf32>
    %16 = math.log %15 : vector<8x1xf32>
    %17 = arith.addf %10, %16 : vector<8x1xf32>
    %c0_7 = arith.constant 0 : index
    %c0_8 = arith.constant 0 : index
    %18 = vector.load %arg2[%c0_7, %c0_8] : memref<8x1xi32, #tpu.memory_space<vmem>>, vector<8x1xi32>
    %19 = vector.broadcast %18 : vector<8x1xi32> to vector<8x128xi32>
    %20 = arith.cmpi eq, %0, %19 : vector<8x128xi32>
    %cst_9 = arith.constant 0.000000e+00 : f32
    %21 = vector.broadcast %cst_9 : f32 to vector<8x128xf32>
    %22 = arith.select %20, %7, %21 : vector<8x128xi1>, vector<8x128xf32>
    %cst_10 = arith.constant dense<0.000000e+00> : vector<8xf32>
    %23 = vector.multi_reduction <add>, %22, %cst_10 [1] : vector<8x128xf32> to vector<8xf32>
    %24 = vector.shape_cast %23 : vector<8xf32> to vector<8x1xf32>
    %c8_i32 = arith.constant 8 : i32
    %25 = arith.muli %arg0, %c8_i32 : i32
    %26 = tpu.iota {dimensions = array<i32: 0>} : vector<8x1xi32>
    %27 = vector.broadcast %25 : i32 to vector<8x1xi32>
    %28 = arith.addi %27, %26 : vector<8x1xi32>
    %c16_i32 = arith.constant 16 : i32
    %29 = vector.broadcast %c16_i32 : i32 to vector<8x1xi32>
    %30 = arith.cmpi slt, %28, %29 : vector<8x1xi32>
    %31 = arith.subf %17, %24 : vector<8x1xf32>
    %cst_11 = arith.constant 0.000000e+00 : f32
    %32 = vector.broadcast %cst_11 : f32 to vector<8x1xf32>
    %33 = arith.select %30, %31, %32 : vector<8x1xi1>, vector<8x1xf32>
    %cst_12 = arith.constant dense<0.000000e+00> : vector<1xf32>
    %34 = vector.multi_reduction <add>, %33, %cst_12 [0] : vector<8x1xf32> to vector<1xf32>
    %35 = vector.shape_cast %34 : vector<1xf32> to vector<1x1xf32>
    %c0_i32 = arith.constant 0 : i32
    %36 = arith.cmpi eq, %arg0, %c0_i32 : i32
    %37 = arith.extui %36 : i1 to i32
    %c0_i32_13 = arith.constant 0 : i32
    %38 = arith.cmpi ne, %37, %c0_i32_13 : i32
    scf.if %38 {
      %cst_18 = arith.constant 0.000000e+00 : f32
      %42 = vector.broadcast %cst_18 : f32 to vector<1x1xf32>
      %c0_19 = arith.constant 0 : index
      %c0_20 = arith.constant 0 : index
      %43 = vector.load %arg5[%c0_19, %c0_20] : memref<1x1xf32, #tpu.memory_space<vmem>>, vector<1x1xf32>
      tpu.vector_store %arg5[%c0_19, %c0_20], %42 {strides = array<i32>} : memref<1x1xf32, #tpu.memory_space<vmem>>, vector<1x1xf32>,
    } else {
    }
    %c0_14 = arith.constant 0 : index
    %c0_15 = arith.constant 0 : index
    %39 = vector.load %arg5[%c0_14, %c0_15] : memref<1x1xf32, #tpu.memory_space<vmem>>, vector<1x1xf32>
    %40 = arith.addf %39, %35 : vector<1x1xf32>
    %c0_16 = arith.constant 0 : index
    %c0_17 = arith.constant 0 : index
    %41 = vector.load %arg5[%c0_16, %c0_17] : memref<1x1xf32, #tpu.memory_space<vmem>>, vector<1x1xf32>
    tpu.vector_store %arg5[%c0_16, %c0_17], %40 {strides = array<i32>} : memref<1x1xf32, #tpu.memory_space<vmem>>, vector<1x1xf32>,
    return
  }
  func.func @transform_0(%arg0: i32) -> (i32, i32) {
    %c0_i32 = arith.constant 0 : i32
    %c0_i32_0 = arith.constant 0 : i32
    return %arg0, %c0_i32 : i32, i32
  }
  func.func @transform_1(%arg0: i32) -> (i32, i32) {
    %c0_i32 = arith.constant 0 : i32
    %c0_i32_0 = arith.constant 0 : i32
    return %arg0, %c0_i32 : i32, i32
  }
  func.func @transform_2(%arg0: i32) -> (i32, i32) {
    %c0_i32 = arith.constant 0 : i32
    %c0_i32_0 = arith.constant 0 : i32
    %c0_i32_1 = arith.constant 0 : i32
    return %c0_i32, %c0_i32_0 : i32, i32
  }
  func.func @transform_3(%arg0: i32) -> (i32, i32) {
    %c0_i32 = arith.constant 0 : i32
    %c0_i32_0 = arith.constant 0 : i32
    return %arg0, %c0_i32 : i32, i32
  }
  func.func @transform_4(%arg0: i32) -> (i32, i32) {
    %c0_i32 = arith.constant 0 : i32
    %c0_i32_0 = arith.constant 0 : i32
    %c0_i32_1 = arith.constant 0 : i32
    return %c0_i32, %c0_i32_0 : i32, i32
  }
}

</mosaic_0001>

<bundles_post_ra>
// kernel: tpu_custom_call.1
= control target key start
LH: loop header
LB: loop body
LE: loop exit
PB: predicated region body
PF: predicated region fallthrough
CT: control target
= control target key end

     0   :  { %10 = vsyncpa [#allocation3], 0  ;;  %s986_s0 = inlined_call_operand.vmem [shape: s32[16,1], index: 0, kind: input, shape index: {}]   ;;  %s987_s1 = inlined_call_operand.vmem [shape: s32[16,1], index: 1, kind: input, shape index: {}]   ;;  %s988_s2 = inlined_call_operand.hbm [shape: f32[128,128], index: 2, kind: input, shape index: {}]   ;;  %s989_s3 = inlined_call_operand.hbm [shape: f32[16,128], index: 3, kind: output, shape index: {0}]   ;;  %s990_s4 = inlined_call_operand.hbm [shape: f32[1,1], index: 4, kind: output, shape index: {1}]  }
   0x1   :  { %11 = vsyncpa [#allocation4], 0 }
   0x2   :  { %13 = vsyncpa [#allocation4 + $0x1], 0 }
   0x3   :  { %14 = vsyncpa [#allocation7], 0  ;;  %s809_s15 = smov 0   ;;  %s811_s16 = smov 0  }
   0x4   :  { %s813_s17 = smov 0   ;;  %s815_s18 = smov 0  }
   0x5 LB: > { %s830_s19 = sadd.s32 4294967295, %s771_s18   ;;  %s481_s20 = sadd.s32 4294967294, %s771_s18   ;;  %s771_s18 = sphi %s815_s18, %s1013_s18   ;;  %s767_s17 = sphi %s813_s17, %s1012_s17   ;;  %s763_s16 = sphi %s811_s16, %s1011_s16   ;;  %s759_s15 = sphi %s809_s15, %s1010_s15  }
   0x6   : > { %s834_s21 = sadd.s32 1, %s771_s18   ;;  %s100_s22 = sadd.s32 1, %s767_s17 }
   0x7   : > { %s97_s23 = ssub.s32 %s771_s18, %s834_s21  ;;  %p110_p0 = scmp.ne.s32.totalorder %s767_s17, %s763_s16 }
   0x8   : > { %p98_p1 = scmp.eq.s32.totalorder %s97_s23, 0  ;;  %p991_p2 = scmp.eq.s32.totalorder %s830_s19, 1 }
   0x9   : > { %p116_p3 = scmp.ne.s32.totalorder %s763_s16, %s759_s15  ;;  %p117_p4 = scmp.eq.s32.totalorder %s481_s20, 1 }
   0xa   : > { %s845_s24 = scalar_select %p98_p1, %s767_s17, %s100_s22  }
   0xb   : > { %p849_p5 = por %p991_p2, %p110_p0  ;;  %p853_p6 = por %p117_p4, %p116_p3 }
   0xc   : > { %p482_p7 = scmp.ge.s32.totalorder %s771_s18, 1  ;;  %p145_p8 = scmp.lt.s32.totalorder %s771_s18, 3 }
   0xd   : > { %s995_s25 = scalar_select %p849_p5, 1, 0 }
   0xe   : > { %s996_s26 = scalar_select %p853_p6, 1, 0 }
   0xf   : > { %p992_p10 = scmp.eq.s32.totalorder %s830_s19, 0  ;;  %p861_p11 = pnand %p482_p7, %p145_p8 }
  0x10   : > { %s773_s28 = smov [#allocation2]   ;;  %s647_s7 = scalar_lea.hbm %s988_s2, 2048 }
  0x11   : > { %s997_s27 = scalar_select %p861_p11, 1, 0 }
  0x12   : > { %s157_s29 = sshll.u32 %s773_s28, 4  ;;  %p586_p12 = pneg %p861_p11  ;;  %s158_s29 = int_to_ptr.vmem [resolvable:$true] %s157_s29 }
  0x13   : > { %p648_p0 = scmp.ne.s32.totalorder %s988_s2, %s647_s7  ;;  %p654_p7 = scmp.lt.u32.totalorder %s647_s7, %s988_s2 }
  0x14   : > { %p869_p13 = pnand %p992_p10, %p586_p12 }
  0x16   : > { %p649_p1 = pneg %p869_p13 }
  0x18   : > { %p650_p3 = pnand %p649_p1, %p648_p0 }
  0x1a   : > { %p651_p4 = pneg %p650_p3 }
  0x1c   : > { %p656_p8 = pnand %p654_p7, %p651_p4 }
  0x1e   : > { %659 = shalt.err (!%p656_p8)
}
  0x1f   : > { %s660_s12 = scalar_lea.vmem %s158_s29, 2048  ;;  %p668_p10 = scmp.lt.s32.totalorder %s158_s29, %s158_s29 }
  0x20   : > { %p661_p12 = scmp.ne.s32.totalorder %s158_s29, %s660_s12  ;;  %p669_p6 = scmp.lt.s32.totalorder %s660_s12, %s660_s12 }
  0x22   : > { %p663_p2 = pnand %p661_p12, %p649_p1  ;;  %p670_p5 = por %p669_p6, %p668_p10 }
  0x24   : > { %p664_p9 = pneg %p663_p2 }
  0x26   : > { %p671_p11 = pnand %p670_p5, %p664_p9 }
  0x28   : > { %674 = shalt.err (!%p671_p11)
}
  0x29   : > { %s774_s13 = smov 128   ;;  %s775_s14 = smov 8  }
  0x2a   : > { %589 = dma.hbm_to_vmem [thread:$0]  (!%p869_p13), %s988_s2, 2048, %s158_s29, [#allocation3], %s774_s13, %s774_s13, %s775_s14  }
  0x2b   : > { %p999_p0 = scmp.ne.s32.totalorder %s997_s27, 0 }
  0x2c   : > { %p1000_p3 = scmp.eq.s32.totalorder (!%p999_p0), %s830_s19, 0 }
  0x2d   : > { %187 = sbr.rel (%p999_p0) target bundleno = 783 (0x30f), region = 32 }
  0x34   : > { %746 = dma.done.wait (%p1000_p3), [#allocation3], 2048   ;;  %p1001_p2 = pmov %p1000_p3 }
  0x35   : > { %p216_p5 = scmp.lt.s32.totalorder %s830_s19, 1  ;;  %v776_v0 = vmov 0   ;;  %v777_v1 = vmov 0.0|0.0   ;;  %v233_v3 = vld [vmem:[#allocation2] sm:$0xff]  ;;  %v234_v4 = vld [vmem:[#allocation2 + $0x8] sm:$0xff]  ;;  %v235_v6 = vld [vmem:[#allocation2 + $0x10] sm:$0xff]  ;;  %v224_v29 = vlaneseq }
  0x36   : > { %748 = vsyncadd (%p1001_p2), [#allocation3], 4294965248  ;;  %641 = vset.pattern.permute.xlu0 %v776_v0  ;;  %552 = vmatprep.subr.bf16.mxu0 %v777_v1  ;;  %v553_v5 = vpack.c.bf16 %v234_v4, %v233_v3  ;;  %v236_v7 = vld [vmem:[#allocation2 + $0x18] sm:$0xff]  ;;  %vm778_vm0 = vmmov 0   ;;  %v779_v8 = vmov 0.0   ;;  %v237_v10 = vld [vmem:[#allocation2 + $0x20] sm:$0xff] }
  0x37   : > { %s217_s23 = scalar_select %p216_p5, %s830_s19, 1  ;;  %642 = vset.pattern.permute.xlu1 %v776_v0  ;;  %549 = vmatprep.mubr.msk.f32.mxu0 %vm778_vm0, %v779_v8  ;;  %v556_v9 = vpack.c.bf16 %v236_v7, %v235_v6  ;;  %v238_v11 = vld [vmem:[#allocation2 + $0x28] sm:$0xff]  ;;  %v239_v14 = vld [vmem:[#allocation2 + $0x30] sm:$0xff]  ;;  %v240_v15 = vld [vmem:[#allocation2 + $0x38] sm:$0xff]  ;;  %v225_v30 = vand.u32 127, %v224_v29  ;;  %v780_v32 = vmov 1.0  }
  0x38   : > { %554 = vmatpush3.bf16.msra.mxu0 %v553_v5  ;;  %v559_v13 = vpack.c.bf16 %v238_v11, %v237_v10  ;;  %v562_v16 = vpack.c.bf16 %v240_v15, %v239_v14  ;;  %v241_v17 = vld [vmem:[#allocation2 + $0x40] sm:$0xff]  ;;  %v242_v18 = vld [vmem:[#allocation2 + $0x48] sm:$0xff]  ;;  %v243_v20 = vld [vmem:[#allocation2 + $0x50] sm:$0xff]  ;;  %s211_s8 = sand.u32 1, %s763_s16   ;;  %s492_s11 = sshll.u32 %s830_s19, 3  ;;  %v340_v42 = vshrl.u32 %v224_v29, 7 }
  0x39   : > { %s488_s28 = sshll.u32 %s217_s23, 3  ;;  %555 = vmatprep.subr.bf16.mxu0 %v777_v1  ;;  %v565_v19 = vpack.c.bf16 %v242_v18, %v241_v17  ;;  %v244_v21 = vld [vmem:[#allocation2 + $0x58] sm:$0xff]  ;;  %v245_v23 = vld [vmem:[#allocation2 + $0x60] sm:$0xff]  ;;  %v246_v24 = vld [vmem:[#allocation2 + $0x68] sm:$0xff]  ;;  %s906_s9 = sshll.u32 %s211_s8, 3  ;;  %v341_v43 = vstv %s492_s11 }
  0x3a   : > { %s219_s27 = scalar_lea.vmem %s986_s0, %s488_s28  ;;  %s223_s7 = scalar_lea.vmem %s987_s1, %s488_s28  ;;  %v568_v22 = vpack.c.bf16 %v244_v21, %v243_v20  ;;  %v571_v25 = vpack.c.bf16 %v246_v24, %v245_v23  ;;  %v247_v26 = vld [vmem:[#allocation2 + $0x70] sm:$0xff]  ;;  %v248_v27 = vld [vmem:[#allocation2 + $0x78] sm:$0xff]  ;;  %v342_v45 = vadd.s32 %v341_v43, %v340_v42 }
  0x3b   : > { %v226_v2 = vld [vmem:[%s219_s27] sm:$0xff]  ;;  %v574_v28 = vpack.c.bf16 %v248_v27, %v247_v26  ;;  %s213_s10 = scalar_lea.vmem [#allocation5], %s906_s9  ;;  %p1002_p6 = scmp.ne.s32.totalorder %s830_s19, 0 }
  0x3c   : > { %228 = vperm.xlu0 %641, %v226_v2   ;;  %v330_v12 = vld [vmem:[%s223_s7] sm:$0xff]  ;;  %557 = vmatpush3.bf16.msra.mxu0 %v556_v9  ;;  %vm343_vm3 = vcmp.lt.s32.totalorder %v342_v45, 16  ;;  %vm356_vm4 = vcmask (!%p1002_p6), 0   ;;  %v781_v57 = vmov (!%p1002_p6), 0.0  }
  0x3d   : > { %332 = vperm.xlu1 %642, %v330_v12   ;;  %558 = vmatprep.subr.bf16.mxu0 %v777_v1  ;;  %357 = vst.msk [vmem:[#allocation6] sm:$0x1] (!%p1002_p6), %vm356_vm4, %v781_v57 }
  0x40   : > { %560 = vmatpush3.bf16.msra.mxu0 %v559_v13 }
  0x41   : > { %561 = vmatprep.subr.bf16.mxu0 %v777_v1 }
  0x44   : > { %563 = vmatpush3.bf16.msra.mxu0 %v562_v16 }
  0x45   : > { %564 = vmatprep.subr.bf16.mxu0 %v777_v1 }
  0x48   : > { %566 = vmatpush3.bf16.msra.mxu0 %v565_v19 }
  0x49   : > { %567 = vmatprep.subr.bf16.mxu0 %v777_v1 }
  0x4c   : > { %569 = vmatpush3.bf16.msra.mxu0 %v568_v22 }
  0x4d   : > { %570 = vmatprep.subr.bf16.mxu0 %v777_v1 }
  0x50   : > { %572 = vmatpush3.bf16.msra.mxu0 %v571_v25 }
  0x51   : > { %573 = vmatprep.subr.bf16.mxu0 %v777_v1 }
  0x54   : > { %575 = vmatpush3.bf16.msra.mxu0 %v574_v28 }
  0xbb   : > { %v229_v31 = vpop.permute.xlu0 %228 }
  0xbc   : > { %vm230_vm1 = vcmp.eq.s32.totalorder %v225_v30, %v229_v31  ;;  %v333_v33 = vpop.permute.xlu1 %332 }
  0xbd   : > { %550 = vmatmul.mubr.msk.f32.vlgmr.msra.gmra.mrb[0].mxu0 %vm230_vm1, %v780_v32  ;;  %vm334_vm2 = vcmp.eq.s32.totalorder %v225_v30, %v333_v33 }
 0x190   : > { %v315_v34 = vpop.f32.mrb[0].mxu0 }
 0x191   : > { %319 = vst [vmem:[%s213_s10] sm:$0xff] %v315_v34  ;;  %320 = vmax.xlane.f32.xlu0 %v315_v34  ;;  %v551_v35 = vpop.f32.mrb[1].mxu0  ;;  %v335_v36 = vsel %vm334_vm2, %v315_v34, 0.0 }
 0x195   : > { %336 = vadd.xlane.f32.xlu0 %v335_v36 }
 0x21e   : > { %v321_v37 = vpop.xlane.xlu0 %320 }
 0x21f   : > { %v322_v38 = vsub.f32 %v315_v34, %v321_v37 }
 0x221   : > { %v323_v39 = vmul.f32 1.442695, %v322_v38 }
 0x222   : > { %v337_v48 = vpop.xlane.xlu0 %336 }
 0x223   : > { %643 = vpow2.f32 %v323_v39 }
 0x22d   : > { %v644_v40 = vpop.eup %643 }
 0x22e   : > { %325 = vadd.xlane.f32.xlu1 %v644_v40 }
 0x2bb   : > { %v326_v41 = vpop.xlane.xlu1 %325 }
 0x2bc   : > { %645 = vlog2.f32 %v326_v41 }
 0x2c6   : > { %v646_v44 = vpop.eup %645 }
 0x2c7   : > { %v328_v46 = vmul.f32 0.6931472, %v646_v44 }
 0x2c9   : > { %v329_v47 = vadd.f32 %v328_v46, %v321_v37 }
 0x2cb   : > { %v344_v49 = vsub.f32 %v329_v47, %v337_v48 }
 0x2cd   : > { %v345_v50 = vsel %vm343_vm3, %v344_v49, 0.0 }
 0x2ce   : > { %v346_v51 = vrot.slane %v345_v50, 4 }
 0x2d0   : > { %v347_v52 = vadd.f32 %v346_v51, %v345_v50 }
 0x2d2   : > { %v348_v53 = vrot.slane %v347_v52, 2  ;;  %355 = sbr.rel (%p1002_p6) target bundleno = 729 (0x2d9), region = 40 }
 0x2d4   : > { %v349_v54 = vadd.f32 %v348_v53, %v347_v52 }
 0x2d6   : > { %v350_v55 = vrot.slane %v349_v54, 1 }
 0x2d8   : > { %v351_v56 = vadd.f32 %v350_v55, %v349_v54 }
 0x2d9 PF: > { %v358_v58 = vld [vmem:[#allocation6] sm:$0x1]  ;;  %vm360_vm5 = vcmask 0   ;;  %s495_s12 = sshll.u32 %s830_s19, 7  ;;  %s376_s22 = sshll.u32 %s213_s10, 4  ;;  %s922_s22 = int_to_ptr.vmem [resolvable:$true] %s376_s22 }
 0x2da   : > { %v359_v59 = vadd.f32 %v358_v58, %v351_v56  ;;  %s918_s20 = scalar_lea.hbm %s989_s3, %s495_s12  ;;  %s363_s23 = scalar_lea.sflag [#allocation4], %s211_s8 }
 0x2db   : > { %s675_s28 = scalar_lea.vmem %s922_s22, 128  ;;  %p1003_p10 = scmp.ne.s32.totalorder %s995_s25, 0 }
 0x2dc   : > { %361 = vst.msk [vmem:[#allocation6] sm:$0x1] %vm360_vm5, %v359_v59  ;;  %p676_p9 = scmp.ne.s32.totalorder %s922_s22, %s675_s28  ;;  %s782_s29 = smov [#allocation5]  }
 0x2dd   : > { %s679_s30 = sshll.u32 %s782_s29, 4  ;;  %s680_s30 = int_to_ptr.vmem [resolvable:$false] %s679_s30 }
 0x2de   : > { %p677_p11 = pnand %p676_p9, %p1003_p10  ;;  %s681_s27 = scalar_lea.vmem %s680_s30, 256 }
 0x2df   : > { %p682_p1 = scmp.lt.s32.totalorder %s922_s22, %s680_s30  ;;  %p683_p4 = scmp.lt.s32.totalorder %s681_s27, %s675_s28 }
 0x2e0   : > { %p678_p13 = pneg %p677_p11 }
 0x2e1   : > { %p684_p7 = por %p683_p4, %p682_p1 }
 0x2e3   : > { %p685_p8 = pnand %p684_p7, %p678_p13 }
 0x2e5   : > { %688 = shalt.err (!%p685_p8)
}
 0x2e6   : > { %s689_s5 = scalar_lea.hbm %s918_s20, 128  ;;  %s693_s8 = scalar_lea.hbm %s989_s3, 256 }
 0x2e7   : > { %p690_p12 = scmp.ne.s32.totalorder %s918_s20, %s689_s5  ;;  %p694_p2 = scmp.lt.u32.totalorder %s918_s20, %s989_s3 }
 0x2e8   : > { %p695_p5 = scmp.lt.u32.totalorder %s693_s8, %s689_s5  ;;  %p697_p9 = scmp.lt.u32.totalorder %s689_s5, %s918_s20 }
 0x2e9   : > { %p691_p0 = pnand %p690_p12, %p1003_p10 }
 0x2ea   : > { %p696_p6 = por %p695_p5, %p694_p2 }
 0x2eb   : > { %p692_p3 = pneg %p691_p0 }
 0x2ec   : > { %p698_p11 = por %p697_p9, %p696_p6 }
 0x2ee   : > { %p699_p13 = pnand %p698_p11, %p692_p3 }
 0x2f0   : > { %702 = shalt.err (!%p699_p13)
}
 0x2f1   : > { %580 = dma.vmem_to_hbm [thread:$0]  (%p1003_p10), %s922_s22, 128, %s918_s20, %s363_s23  }
 0x2f2   : > { %s783_s11 = smov [#allocation6]   ;;  %p1004_p4 = scmp.eq.s32.totalorder %s830_s19, 1 }
 0x2f3   : > { %s387_s12 = sshll.u32 %s783_s11, 4  ;;  %s388_s12 = int_to_ptr.vmem [resolvable:$true] %s387_s12 }
 0x2f4   : > { %s703_s13 = scalar_lea.vmem %s388_s12, 16  ;;  %s709_s14 = scalar_lea.vmem %s388_s12, 32 }
 0x2f5   : > { %p704_p1 = scmp.ne.s32.totalorder %s388_s12, %s703_s13  ;;  %p710_p12 = scmp.lt.s32.totalorder %s388_s12, %s388_s12 }
 0x2f6   : > { %p711_p0 = scmp.lt.s32.totalorder %s709_s14, %s703_s13 }
 0x2f7   : > { %p705_p7 = pnand %p704_p1, %p1004_p4 }
 0x2f8   : > { %p712_p2 = por %p711_p0, %p710_p12 }
 0x2f9   : > { %p706_p8 = pneg %p705_p7 }
 0x2fb   : > { %p713_p3 = pnand %p712_p2, %p706_p8 }
 0x2fd   : > { %716 = shalt.err (!%p713_p3)
}
 0x2fe   : > { %s717_s29 = scalar_lea.hbm %s990_s4, 16  ;;  %p1005_p5 = pmov %p1004_p4 }
 0x2ff   : > { %p718_p10 = scmp.ne.s32.totalorder %s990_s4, %s717_s29  ;;  %p723_p11 = scmp.lt.u32.totalorder %s717_s29, %s990_s4 }
 0x301   : > { %p719_p6 = pnand %p718_p10, %p1005_p5 }
 0x303   : > { %p720_p9 = pneg %p719_p6 }
 0x305   : > { %p725_p13 = pnand %p723_p11, %p720_p9 }
 0x307   : > { %728 = shalt.err (!%p725_p13)
}
 0x308   : > { %p1006_p1 = pmov %p1004_p4 }
 0x30a   : > { %582 = dma.vmem_to_hbm [thread:$0]  (%p1006_p1), %s388_s12, 16, %s990_s4, [#allocation7]  }
 0x30b   : > { %p1007_p4 = pmov %p1006_p1 }
 0x30c   : > { %p1008_p7 = pmov %p1006_p1 }
 0x30d   : > { %750 = dma.done.wait (%p1007_p4), [#allocation7], 16  }
 0x30e   : > { %752 = vsyncadd (%p1008_p7), [#allocation7], 4294967280 }
 0x30f PF: > { %p598_p8 = scmp.ge.s32.totalorder %s771_s18, 2  ;;  %s403_s6 = sand.u32 1, %s759_s15  }
 0x310   : > { %p1009_p12 = scmp.ne.s32.totalorder %s996_s26, 0  ;;  %s404_s7 = scalar_lea.sflag [#allocation4], %s403_s6 }
 0x312   : > { %p591_p0 = pnand %p598_p8, %p1009_p12 }
 0x314   : > { %754 = dma.done.wait (!%p591_p0), %s404_s7, 128  }
 0x315   : > { %756 = vsyncadd (!%p591_p0), %s404_s7, 4294967168  ;;  %p17_p2 = scmp.ge.s32.totalorder %s834_s21, 4   ;;  %s1010_s15 = smov %s763_s16 }
 0x316   : > { %s1011_s16 = smov %s767_s17  ;;  %s1012_s17 = smov %s845_s24 }
 0x317   : > { %s1013_s18 = smov %s834_s21  ;;  %19 = sbr.rel (!%p17_p2) target bundleno = 5 (0x5), region = 87 }
 0x31e   :  { %409 = vsyncpa [#allocation3], 1 }
 0x31f   :  { %411 = vsyncpa [#allocation3 + $0x1], 1 }
 0x320   :  { %412 = vsyncpa [#allocation4], 1 }
 0x321   :  { %414 = vsyncpa [#allocation4 + $0x1], 1 }
 0x322   :  { %415 = vsyncpa [#allocation7], 1 }

</bundles_post_ra>
